<compile_context>
chip_gen: v7x
topology: tpu7x:2x2x1
jax: 0.10.0
libtpu: 0.0.40
codegen_flags: <defaults>
</compile_context>

<pallas_src>
import functools
import math

import numpy as np
import jax
import jax.numpy as jnp
from jax import lax
from jax.experimental import pallas as pl
from jax.experimental.pallas import tpu as pltpu


# ------------------------------- Pallas kernel --------------------------------

def fused_gate_kernel(xg_ref, wtg_ref, wpsi_ref, ut_ref, x_ref, ww_ref, bw_ref,
                      out_ref, sig_ref, *, batch, n_ch, sq, s_full):
    """theta+phi+biases (one matmul) -> ReLU -> psi -> sigmoid -> per-batch
    align_corners trilinear upsample (matmul) -> gate*x -> W 1x1x1 conv ->
    InstanceNorm3d, entirely in VMEM."""
    # (1) theta (strided conv as patch matmul) + phi (1x1x1) + b_phi in ONE MXU
    #     matmul; a trailing ones row in xg carries the biases and a unit row
    #     in wtg lets b_psi fold into the psi weights below.
    f = jnp.maximum(jnp.dot(wtg_ref[...], xg_ref[...],
                            preferred_element_type=jnp.float32), 0.0)  # (Ci+1, B*Sq)

    # (2) psi: tiny-K (Ci=2) projection on the VPU + sublane reduce instead of
    #     an N=1 MXU matmul; b_psi rides along via the unit row of f.
    s = jnp.sum(f * wpsi_ref[...], axis=0, keepdims=True)              # (1, B*Sq)
    sig_small = jax.nn.sigmoid(s)

    # (3) align_corners trilinear upsample as per-batch (1,Sq)@(Sq,S) matmuls
    #     with a SINGLE shared (Sq, S) weight matrix (no eye(B) block-diagonal),
    #     writing each lane-dense (1, S) row straight into the sig output.
    gate_rows = []
    for b in range(batch):                                             # static unroll
        sb = sig_small[:, b * sq:(b + 1) * sq]                         # (1, Sq)
        up = jnp.dot(sb, ut_ref[...], preferred_element_type=jnp.float32)  # (1, S)
        sig_ref[b:b + 1, :] = up.astype(sig_ref.dtype)
        gate_rows.append(jnp.broadcast_to(up, (n_ch, s_full)))
    sig_full = jnp.concatenate(gate_rows, axis=0)                      # (B*C, S)

    # (4) gate + W 1x1x1 conv, batch-and-channel packed on sublanes so the
    #     elementwise / reduce path uses all 8 sublanes of each vreg; the conv
    #     is one (B*C, B*C) @ (B*C, S) matmul with kron(I_B, w_W) weights.
    y = x_ref[...] * sig_full                                          # (B*C, S)
    z = jnp.dot(ww_ref[...], y, preferred_element_type=jnp.float32) + bw_ref[...]

    # (5) InstanceNorm3d (affine=False, eps=1e-5): each (batch, channel) pair is
    #     its own sublane row -> a single row-wise lane reduction, one full store.
    mean = jnp.mean(z, axis=-1, keepdims=True)
    var = jnp.mean(jnp.square(z - mean), axis=-1, keepdims=True)
    out_ref[...] = ((z - mean) * lax.rsqrt(var + 1e-5)).astype(out_ref.dtype)


def _fused_gate(xg, wtg, wpsi, ut, x2, wwk, bw, *, batch, n_ch, sq, s_full):
    vmem = pl.BlockSpec(memory_space=pltpu.MemorySpace.VMEM)
    return pl.pallas_call(
        functools.partial(fused_gate_kernel, batch=batch, n_ch=n_ch,
                          sq=sq, s_full=s_full),
        out_shape=(jax.ShapeDtypeStruct((batch * n_ch, s_full), jnp.float32),
                   jax.ShapeDtypeStruct((batch, s_full), jnp.float32)),
        in_specs=[vmem] * 7,
        out_specs=(vmem, vmem),
    )(xg, wtg, wpsi, ut, x2, wwk, bw)


# ------------------------------ interpolation glue -----------------------------

def _interp_matrix_ac(out_n, in_n):
    """(out_n, in_n) 1-D linear interpolation matrix, align_corners=True."""
    m = np.zeros((out_n, in_n), np.float32)
    if in_n == 1:
        m[:, 0] = 1.0
        return m
    if out_n == 1:
        coords = np.zeros((1,), np.float64)
    else:
        coords = np.arange(out_n, dtype=np.float64) * (in_n - 1) / (out_n - 1)
    i0 = np.clip(np.floor(coords).astype(np.int64), 0, in_n - 2)
    w = (coords - i0).astype(np.float32)
    rows = np.arange(out_n)
    m[rows, i0] = 1.0 - w
    m[rows, i0 + 1] += w
    return m


def _interp_axis(arr, axis, out_n):
    in_n = arr.shape[axis]
    if in_n == out_n:
        return arr
    if in_n == 1:
        return jnp.repeat(arr, out_n, axis=axis)
    if out_n == 1:
        coords = jnp.zeros((1,), jnp.float32)
    else:
        coords = jnp.arange(out_n, dtype=jnp.float32) * (in_n - 1) / (out_n - 1)
    i0 = jnp.clip(jnp.floor(coords).astype(jnp.int32), 0, in_n - 2)
    i1 = i0 + 1
    w = coords - i0.astype(jnp.float32)
    a0 = jnp.take(arr, i0, axis=axis)
    a1 = jnp.take(arr, i1, axis=axis)
    shape = [1] * arr.ndim
    shape[axis] = out_n
    w = w.reshape(shape)
    return a0 * (1.0 - w) + a1 * w


def resize_trilinear_ac(x, size):
    """Trilinear resize of (B, C, D, H, W), align_corners=True."""
    for axis, out_n in zip((2, 3, 4), size):
        x = _interp_axis(x, axis, out_n)
    return x


# --------------------------------- forward ------------------------------------

def grid_attention_forward(x, g, params, ssf=(2, 2, 2)):
    """Returns (W_y, sigm_psi_f) exactly like GridAttentionBlockND._concatenation."""
    B, C, D, H, W = x.shape
    kd, kh, kw = ssf
    Do, Ho, Wo = (D - kd) // kd + 1, (H - kh) // kh + 1, (W - kw) // kw + 1
    Sq, S = Do * Ho * Wo, D * H * W
    Ci = params["w_theta"].shape[0]
    Cg = g.shape[1]
    Ck = C * kd * kh * kw

    # theta: conv with kernel == stride, no padding  ==> 2x2x2 patch matmul.
    # TODO(synk): at scale, read these strided patches via a BlockSpec index_map
    # instead of materializing a transposed copy of x.
    xc = x[:, :, : Do * kd, : Ho * kh, : Wo * kw]
    xp = xc.reshape(B, C, Do, kd, Ho, kh, Wo, kw)
    xp_t = jnp.transpose(xp, (0, 2, 4, 6, 1, 3, 5, 7)).reshape(B * Sq, Ck).T

    # phi is pointwise-linear, so it commutes with the trilinear interpolation:
    # resize g here (identity at these shapes), apply phi inside the kernel.
    g_up = resize_trilinear_ac(g, (Do, Ho, Wo))                     # (B,Cg,Do,Ho,Wo)
    gup_t = jnp.transpose(g_up.reshape(B, Cg, Sq), (1, 0, 2)).reshape(Cg, B * Sq)

    # Fused theta+phi operand with a trailing ones row (carries b_phi / b_psi).
    ones_row = jnp.ones((1, B * Sq), jnp.float32)
    xg = jnp.concatenate([xp_t, gup_t, ones_row], axis=0)           # (Ck+Cg+1, B*Sq)

    wtg_top = jnp.concatenate([params["w_theta"].reshape(Ci, Ck),
                               params["w_phi"],
                               params["b_phi"].reshape(Ci, 1)], axis=1)
    unit_row = jnp.concatenate([jnp.zeros((1, Ck + Cg), jnp.float32),
                                jnp.ones((1, 1), jnp.float32)], axis=1)
    wtg = jnp.concatenate([wtg_top, unit_row], axis=0)              # (Ci+1, Ck+Cg+1)

    wpsi = jnp.concatenate([params["w_psi"].reshape(1, Ci).T,
                            params["b_psi"].reshape(1, 1)], axis=0)  # (Ci+1, 1)

    # Per-batch align_corners trilinear upsample weights (separable kron of the
    # three axis matrices) -- NO eye(B) kron, shared across the batch.
    # TODO(synk): at realistic scale use three per-axis matmuls instead.
    u = np.kron(_interp_matrix_ac(D, Do),
                np.kron(_interp_matrix_ac(H, Ho),
                        _interp_matrix_ac(W, Wo)))                  # (S, Sq)
    ut = jnp.asarray(u.T)                                           # (Sq, S)

    # Gating / W / InstanceNorm path in (B*C, S) layout: pure (free) reshapes,
    # no host-side transposes of x or of the outputs.
    x2 = x.reshape(B * C, S)
    wwk = jnp.kron(jnp.eye(B, dtype=jnp.float32), params["w_W"])    # (B*C, B*C)
    bw = jnp.tile(params["b_W"], B).reshape(B * C, 1)

    out2, sig2 = _fused_gate(xg, wtg, wpsi, ut, x2, wwk, bw,
                             batch=B, n_ch=C, sq=Sq, s_full=S)

    W_y = out2.reshape(B, C, D, H, W)
    sigm_psi_f = sig2.reshape(B, 1, D, H, W)
    return W_y, sigm_psi_f


# ------------------------------ pure-JAX reference -----------------------------

def reference(x, g, params, ssf=(2, 2, 2)):
    theta_x = lax.conv_general_dilated(
        x, params["w_theta"], window_strides=ssf, padding="VALID",
        dimension_numbers=("NCDHW", "OIDHW", "NCDHW"))
    phi_g = jnp.einsum("oc,bcdhw->bodhw", params["w_phi"], g) \
        + params["b_phi"][None, :, None, None, None]
    phi_g_up = resize_trilinear_ac(phi_g, theta_x.shape[2:])
    f = jnp.maximum(theta_x + phi_g_up, 0.0)
    s = jnp.einsum("oc,bcdhw->bodhw", params["w_psi"], f) \
        + params["b_psi"][None, :, None, None, None]
    sig = jax.nn.sigmoid(s)
    sig_up = resize_trilinear_ac(sig, x.shape[2:])
    y = sig_up * x
    z = jnp.einsum("oc,bcdhw->bodhw", params["w_W"], y) \
        + params["b_W"][None, :, None, None, None]
    mean = jnp.mean(z, axis=(2, 3, 4), keepdims=True)
    var = jnp.mean((z - mean) ** 2, axis=(2, 3, 4), keepdims=True)
    return (z - mean) / jnp.sqrt(var + 1e-5), sig_up


# --------------------------------- main ----------------------------------------

if __name__ == "__main__":
    in_ch, gate_ch = 4, 8
    inter_ch = in_ch // 2            # module default (in_channels // 2)
    ssf = (2, 2, 2)
    B, D, H, W = 2, 8, 8, 8
    Dg, Hg, Wg = 4, 4, 4             # gating signal at half resolution

    keys = jax.random.split(jax.random.PRNGKey(0), 9)
    x = jax.random.normal(keys[0], (B, in_ch, D, H, W), jnp.float32)
    g = jax.random.normal(keys[1], (B, gate_ch, Dg, Hg, Wg), jnp.float32)

    # Deterministic Kaiming-style (fan_in, a=0) init; biases small uniform.
    params = {
        "w_theta": jax.random.normal(keys[2], (inter_ch, in_ch) + ssf, jnp.float32)
        * math.sqrt(2.0 / (in_ch * ssf[0] * ssf[1] * ssf[2])),
        "w_phi": jax.random.normal(keys[3], (inter_ch, gate_ch), jnp.float32)
        * math.sqrt(2.0 / gate_ch),
        "b_phi": jax.random.uniform(keys[4], (inter_ch,), jnp.float32, -0.3, 0.3),
        "w_psi": jax.random.normal(keys[5], (1, inter_ch), jnp.float32)
        * math.sqrt(2.0 / inter_ch),
        "b_psi": jax.random.uniform(keys[6], (1,), jnp.float32, -0.3, 0.3),
        "w_W": jax.random.normal(keys[7], (in_ch, in_ch), jnp.float32)
        * math.sqrt(2.0 / in_ch),
        "b_W": jax.random.uniform(keys[8], (in_ch,), jnp.float32, -0.3, 0.3),
    }

    fwd = jax.jit(functools.partial(grid_attention_forward, ssf=ssf))
    W_y, sig = fwd(x, g, params)
    jax.block_until_ready((W_y, sig))

    W_y_exp, sig_exp = reference(x, g, params, ssf)
    assert W_y.shape == (B, in_ch, D, H, W) and sig.shape == (B, 1, D, H, W)
    assert jnp.allclose(sig, sig_exp, atol=1e-5, rtol=1e-5), \
        float(jnp.max(jnp.abs(sig - sig_exp)))
    assert jnp.allclose(W_y, W_y_exp, atol=1e-4, rtol=1e-4), \
        float(jnp.max(jnp.abs(W_y - W_y_exp)))

    print("KERNEL_OK")
</pallas_src>

<mosaic_0001>
module attributes {stable_mosaic.version = 11 : i64} {
  func.func @fused_gate_kernel(%arg0: memref<41x128xf32, #tpu.memory_space<vmem>>, %arg1: memref<3x41xf32, #tpu.memory_space<vmem>>, %arg2: memref<3x1xf32, #tpu.memory_space<vmem>>, %arg3: memref<64x512xf32, #tpu.memory_space<vmem>>, %arg4: memref<8x512xf32, #tpu.memory_space<vmem>>, %arg5: memref<8x8xf32, #tpu.memory_space<vmem>>, %arg6: memref<8x1xf32, #tpu.memory_space<vmem>>, %arg7: memref<8x512xf32, #tpu.memory_space<vmem>>, %arg8: memref<2x512xf32, #tpu.memory_space<vmem>>) attributes {dimension_semantics = [], scalar_prefetch = 0 : i64, scratch_operands = 0 : i64, tpu.core_type = #tpu.core_type<tc>} {
    %c0 = arith.constant 0 : index
    %c0_0 = arith.constant 0 : index
    %0 = vector.load %arg1[%c0, %c0_0] : memref<3x41xf32, #tpu.memory_space<vmem>>, vector<3x41xf32>
    %c0_1 = arith.constant 0 : index
    %c0_2 = arith.constant 0 : index
    %1 = vector.load %arg0[%c0_1, %c0_2] : memref<41x128xf32, #tpu.memory_space<vmem>>, vector<41x128xf32>
    %cst = arith.constant dense<0.000000e+00> : vector<3x128xf32>
    %2 = tpu.matmul %0, %1, %cst {dimension_numbers = #tpu.dot_dimension_numbers<[1], [0], [0], [1], [0, 0, 1, 1], [], []>} : vector<3x41xf32>, vector<41x128xf32>, vector<3x128xf32> -> vector<3x128xf32>
    %cst_3 = arith.constant 0.000000e+00 : f32
    %3 = vector.broadcast %cst_3 : f32 to vector<3x128xf32>
    %4 = arith.maximumf %2, %3 : vector<3x128xf32>
    %c0_4 = arith.constant 0 : index
    %c0_5 = arith.constant 0 : index
    %5 = vector.load %arg2[%c0_4, %c0_5] : memref<3x1xf32, #tpu.memory_space<vmem>>, vector<3x1xf32>
    %6 = vector.broadcast %5 : vector<3x1xf32> to vector<3x128xf32>
    %7 = arith.mulf %4, %6 : vector<3x128xf32>
    %cst_6 = arith.constant dense<0.000000e+00> : vector<128xf32>
    %8 = vector.multi_reduction <add>, %7, %cst_6 [0] : vector<3x128xf32> to vector<128xf32>
    %9 = vector.shape_cast %8 : vector<128xf32> to vector<1x128xf32>
    %10 = arith.negf %9 : vector<1x128xf32>
    %11 = math.exp %10 : vector<1x128xf32>
    %cst_7 = arith.constant 1.000000e+00 : f32
    %12 = vector.broadcast %cst_7 : f32 to vector<1x128xf32>
    %13 = arith.addf %12, %11 : vector<1x128xf32>
    %14 = arith.divf %12, %13 : vector<1x128xf32>
    %15 = vector.extract_strided_slice %14 {offsets = [0, 0], sizes = [1, 64], strides = [1, 1]} : vector<1x128xf32> to vector<1x64xf32>
    %c0_8 = arith.constant 0 : index
    %c0_9 = arith.constant 0 : index
    %16 = vector.load %arg3[%c0_8, %c0_9] : memref<64x512xf32, #tpu.memory_space<vmem>>, vector<64x512xf32>
    %cst_10 = arith.constant dense<0.000000e+00> : vector<1x512xf32>
    %17 = tpu.matmul %15, %16, %cst_10 {dimension_numbers = #tpu.dot_dimension_numbers<[1], [0], [0], [1], [0, 0, 1, 1], [], []>} : vector<1x64xf32>, vector<64x512xf32>, vector<1x512xf32> -> vector<1x512xf32>
    %c0_11 = arith.constant 0 : index
    %c0_12 = arith.constant 0 : index
    %18 = vector.load %arg8[%c0_11, %c0_12] : memref<2x512xf32, #tpu.memory_space<vmem>>, vector<1x512xf32>
    tpu.vector_store %arg8[%c0_11, %c0_12], %17 {strides = array<i32>} : memref<2x512xf32, #tpu.memory_space<vmem>>, vector<1x512xf32>,
    %19 = vector.shape_cast %17 : vector<1x512xf32> to vector<1x512xf32>
    %20 = vector.broadcast %19 : vector<1x512xf32> to vector<4x512xf32>
    %21 = vector.extract_strided_slice %14 {offsets = [0, 64], sizes = [1, 64], strides = [1, 1]} : vector<1x128xf32> to vector<1x64xf32>
    %c0_13 = arith.constant 0 : index
    %c0_14 = arith.constant 0 : index
    %22 = vector.load %arg3[%c0_13, %c0_14] : memref<64x512xf32, #tpu.memory_space<vmem>>, vector<64x512xf32>
    %cst_15 = arith.constant dense<0.000000e+00> : vector<1x512xf32>
    %23 = tpu.matmul %21, %22, %cst_15 {dimension_numbers = #tpu.dot_dimension_numbers<[1], [0], [0], [1], [0, 0, 1, 1], [], []>} : vector<1x64xf32>, vector<64x512xf32>, vector<1x512xf32> -> vector<1x512xf32>
    %c1 = arith.constant 1 : index
    %c0_16 = arith.constant 0 : index
    %24 = vector.load %arg8[%c1, %c0_16] : memref<2x512xf32, #tpu.memory_space<vmem>>, vector<1x512xf32>
    tpu.vector_store %arg8[%c1, %c0_16], %23 {strides = array<i32>} : memref<2x512xf32, #tpu.memory_space<vmem>>, vector<1x512xf32>,
    %25 = vector.shape_cast %23 : vector<1x512xf32> to vector<1x512xf32>
    %26 = vector.broadcast %25 : vector<1x512xf32> to vector<4x512xf32>
    %27 = tpu.concatenate %20, %26 in 0 : vector<4x512xf32>, vector<4x512xf32> -> vector<8x512xf32>
    %c0_17 = arith.constant 0 : index
    %c0_18 = arith.constant 0 : index
    %28 = vector.load %arg4[%c0_17, %c0_18] : memref<8x512xf32, #tpu.memory_space<vmem>>, vector<8x512xf32>
    %29 = arith.mulf %28, %27 : vector<8x512xf32>
    %c0_19 = arith.constant 0 : index
    %c0_20 = arith.constant 0 : index
    %30 = vector.load %arg5[%c0_19, %c0_20] : memref<8x8xf32, #tpu.memory_space<vmem>>, vector<8x8xf32>
    %cst_21 = arith.constant dense<0.000000e+00> : vector<8x512xf32>
    %31 = tpu.matmul %30, %29, %cst_21 {dimension_numbers = #tpu.dot_dimension_numbers<[1], [0], [0], [1], [0, 0, 1, 1], [], []>} : vector<8x8xf32>, vector<8x512xf32>, vector<8x512xf32> -> vector<8x512xf32>
    %c0_22 = arith.constant 0 : index
    %c0_23 = arith.constant 0 : index
    %32 = vector.load %arg6[%c0_22, %c0_23] : memref<8x1xf32, #tpu.memory_space<vmem>>, vector<8x1xf32>
    %33 = vector.broadcast %32 : vector<8x1xf32> to vector<8x512xf32>
    %34 = arith.addf %31, %33 : vector<8x512xf32>
    %cst_24 = arith.constant dense<0.000000e+00> : vector<8xf32>
    %35 = vector.multi_reduction <add>, %34, %cst_24 [1] : vector<8x512xf32> to vector<8xf32>
    %36 = vector.shape_cast %35 : vector<8xf32> to vector<8x1xf32>
    %cst_25 = arith.constant 5.120000e+02 : f32
    %37 = vector.broadcast %cst_25 : f32 to vector<8x1xf32>
    %38 = arith.divf %36, %37 : vector<8x1xf32>
    %39 = vector.broadcast %38 : vector<8x1xf32> to vector<8x512xf32>
    %40 = arith.subf %34, %39 : vector<8x512xf32>
    %41 = arith.mulf %40, %40 : vector<8x512xf32>
    %cst_26 = arith.constant dense<0.000000e+00> : vector<8xf32>
    %42 = vector.multi_reduction <add>, %41, %cst_26 [1] : vector<8x512xf32> to vector<8xf32>
    %43 = vector.shape_cast %42 : vector<8xf32> to vector<8x1xf32>
    %cst_27 = arith.constant 5.120000e+02 : f32
    %44 = vector.broadcast %cst_27 : f32 to vector<8x1xf32>
    %45 = arith.divf %43, %44 : vector<8x1xf32>
    %46 = vector.broadcast %38 : vector<8x1xf32> to vector<8x512xf32>
    %47 = arith.subf %34, %46 : vector<8x512xf32>
    %cst_28 = arith.constant 9.99999974E-6 : f32
    %48 = vector.broadcast %cst_28 : f32 to vector<8x1xf32>
    %49 = arith.addf %45, %48 : vector<8x1xf32>
    %50 = math.rsqrt %49 : vector<8x1xf32>
    %51 = vector.broadcast %50 : vector<8x1xf32> to vector<8x512xf32>
    %52 = arith.mulf %47, %51 : vector<8x512xf32>
    %c0_29 = arith.constant 0 : index
    %c0_30 = arith.constant 0 : index
    %53 = vector.load %arg7[%c0_29, %c0_30] : memref<8x512xf32, #tpu.memory_space<vmem>>, vector<8x512xf32>
    tpu.vector_store %arg7[%c0_29, %c0_30], %52 {strides = array<i32>} : memref<8x512xf32, #tpu.memory_space<vmem>>, vector<8x512xf32>,
    return
  }
}

</mosaic_0001>

<bundles_post_ra>
// kernel: tile.8
= control target key start
LH: loop header
LB: loop body
LE: loop exit
PB: predicated region body
PF: predicated region fallthrough
CT: control target
= control target key end

     0   :  { %s22_s0 = inlined_call_operand.vmem [shape: f32[4], index: 0, kind: input, shape index: {}]   ;;  %s23_s1 = inlined_call_operand.vmem [shape: f32[2,4], index: 1, kind: output, shape index: {}]  }
   0x1   :  { %v4_v0 = vld [vmem:[%s22_s0] ss:$0 sm:$0xff] }
   0x2   :  { %5 = vst [vmem:[%s23_s1] sm:$0x3] %v4_v0 }

// kernel: tile.0
= control target key start
LH: loop header
LB: loop body
LE: loop exit
PB: predicated region body
PF: predicated region fallthrough
CT: control target
= control target key end

     0   :  { %s34_s8 = smov 125   ;;  %vm7_vm0 = vcmask 7168   ;;  %s35_s11 = smov 126   ;;  %s61_s0 = inlined_call_operand.vmem [shape: f32[2,4], index: 0, kind: input, shape index: {}]   ;;  %s62_s1 = inlined_call_operand.vmem [shape: f32[8,1], index: 1, kind: output, shape index: {}]  }
   0x1   :  { %v4_v0 = vld [vmem:[%s61_s0] sm:$0x3]  ;;  %s33_s0 = smov 127  }
   0x2   :  { %5 = vst [vmem:[#allocation0] sm:$0x3] %v4_v0 }
   0x9   :  { %v9_v1 = vld [vmem:[#allocation0] sm:$0x3]  }
   0xa   :  { %v21_v2 = vld [vmem:[#allocation0] sm:$0x3]   ;;  %10 = vrot.lane.b32.xlu0 %v9_v1, %s33_s0 }
   0xb   :  { %22 = vrot.lane.b32.xlu1 %v21_v2, %s34_s8  ;;  %v6_v3 = vld [vmem:[#allocation0] sm:$0x3]  }
   0xc   :  { %v15_v4 = vld [vmem:[#allocation0] sm:$0x3]   ;;  %8 = vst.msk [vmem:[%s62_s1] ss:$4 sm:$0x3] %vm7_vm0, %v6_v3  }
   0xe   :  { %16 = vrot.lane.b32.xlu0 %v15_v4, %s35_s11 }
  0x7c   :  { %v11_v5 = vpop.permute.xlu0 %10  }
  0x7d   :  { %v23_v6 = vpop.permute.xlu1 %22   ;;  %27 = vst.msk [vmem:[%s62_s1 + $0x1] ss:$4 sm:$0x3] %vm7_vm0, %v11_v5  }
  0x7e   :  { %29 = vst.msk [vmem:[%s62_s1 + $0x3] ss:$4 sm:$0x3] %vm7_vm0, %v23_v6  }
  0x80   :  { %v17_v7 = vpop.permute.xlu0 %16  }
  0x81   :  { %28 = vst.msk [vmem:[%s62_s1 + $0x2] ss:$4 sm:$0x3] %vm7_vm0, %v17_v7  }

// kernel: grid_attention_forward.1
= control target key start
LH: loop header
LB: loop body
LE: loop exit
PB: predicated region body
PF: predicated region fallthrough
CT: control target
= control target key end

     0   :  { %v914_v0 = vmov 0.0|0.0   ;;  %vm915_vm0 = vmmov 0   ;;  %v916_v6 = vmov 0.0   ;;  %v917_v7 = vmov 0   ;;  %s1169_s0 = inlined_call_operand.vmem [shape: f32[41,128], index: 0, kind: input, shape index: {}]   ;;  %s1170_s2 = inlined_call_operand.vmem [shape: f32[3,1], index: 2, kind: input, shape index: {}]   ;;  %s1171_s1 = inlined_call_operand.vmem [shape: f32[3,41], index: 1, kind: input, shape index: {}]   ;;  %s1172_s3 = inlined_call_operand.vmem [shape: f32[64,512], index: 3, kind: input, shape index: {}]   ;;  %s1173_s6 = inlined_call_operand.vmem [shape: f32[8,1], index: 6, kind: input, shape index: {}]   ;;  %s1174_s8 = inlined_call_operand.vmem [shape: f32[2,512], index: 8, kind: output, shape index: {1}]   ;;  %s1175_s4 = inlined_call_operand.vmem [shape: f32[8,512], index: 4, kind: input, shape index: {}]   ;;  %s1176_s5 = inlined_call_operand.vmem [shape: f32[8,8], index: 5, kind: input, shape index: {}]   ;;  %s1177_s7 = inlined_call_operand.vmem [shape: f32[8,512], index: 7, kind: output, shape index: {0}]  }
   0x1   :  { %825 = vmatprep.subr.bf16.mxu0 %v914_v0  ;;  %v29_v1 = vld [vmem:[%s1169_s0] sm:$0xff]  ;;  %v30_v2 = vld [vmem:[%s1169_s0 + $0x8] sm:$0xff]  ;;  %v31_v3 = vld [vmem:[%s1169_s0 + $0x10] sm:$0xff]  ;;  %822 = vmatprep.mubr.msk.f32.mxu0 %vm915_vm0, %v916_v6  ;;  %vm39_vm1 = vcmask 1040384   ;;  %vm918_vm2 = vmmov 1   ;;  %vm35_vm4 = vcmask 334848  }
   0x2   :  { %v826_v4 = vpack.c.bf16 %v30_v2, %v29_v1  ;;  %v32_v5 = vld [vmem:[%s1169_s0 + $0x18] sm:$0xff]  ;;  %906 = vset.pattern.permute.xlu0 %v917_v7  ;;  %v114_v8 = vld [vmem:[%s1170_s2] sm:$0x7]  ;;  %235 = vmatprep.mubr.f32.mxu1 %v916_v6  ;;  %v34_v11 = vld [vmem:[%s1169_s0 + $0x28] sm:$0x1]  ;;  %vm121_vm5 = vcmask 1042432  }
   0x3   :  { %907 = vset.pattern.permute.xlu1 %v917_v7  ;;  %v829_v9 = vpack.c.bf16 %v32_v5, %v31_v3  ;;  %117 = vperm.xlu0 %906, %v114_v8   ;;  %v33_v10 = vld [vmem:[%s1169_s0 + $0x20] sm:$0xff]  ;;  %vm833_vm3 = vmpackc.low %vm39_vm1, %vm918_vm2  ;;  %v136_v14 = vld [vmem:[%s1172_s3 + $0x8] sm:$0xff]  ;;  %vm167_vm6 = vcmask 523264   ;;  %vm588_vm8 = vcmask 1043456   ;;  %vm608_vm9 = vcmask 64512  }
   0x4   :  { %827 = vmatpush3.bf16.msra.mxu0 %v826_v4  ;;  %v832_v12 = vpack.c.bf16 %v34_v11, %v33_v10  ;;  %v28_v13 = vld [vmem:[%s1171_s1] sm:$0x7]  ;;  %v140_v15 = vld [vmem:[%s1172_s3 + $0x28] sm:$0xff]  ;;  %v138_v16 = vld [vmem:[%s1172_s3 + $0x18] sm:$0xff] }
   0x5   :  { %828 = vmatprep.subr.bf16.mxu0 %v914_v0  ;;  %v835_v17 = vpack.c.bf16 %v140_v15, %v136_v14  ;;  %v142_v18 = vld [vmem:[%s1172_s3 + $0x38] sm:$0xff]  ;;  %v135_v19 = vld [vmem:[%s1172_s3] sm:$0xff]  ;;  %v137_v23 = vld [vmem:[%s1172_s3 + $0x10] sm:$0xff] }
   0x6   :  { %v139_v20 = vld [vmem:[%s1172_s3 + $0x20] sm:$0xff]  ;;  %v851_v21 = vpack.c.bf16 %v142_v18, %v138_v16  ;;  %v141_v24 = vld [vmem:[%s1172_s3 + $0x30] sm:$0xff]  ;;  %v144_v26 = vld [vmem:[%s1172_s3 + $0x48] sm:$0xff]  ;;  %v322_v16 = vlaneseq }
   0x7   :  { %v1011_v22 = vpack.c.bf16 %v139_v20, %v135_v19  ;;  %836 = vmatprep.subr.bf16.mxu1 %v835_v17  ;;  %v1019_v25 = vpack.c.bf16 %v141_v24, %v137_v23  ;;  %v148_v27 = vld [vmem:[%s1172_s3 + $0x68] sm:$0xff]  ;;  %v146_v28 = vld [vmem:[%s1172_s3 + $0x58] sm:$0xff]  ;;  %v143_v31 = vld [vmem:[%s1172_s3 + $0x40] sm:$0xff] }
   0x8   :  { %830 = vmatpush3.bf16.msra.mxu0 %v829_v9  ;;  %v1032_v29 = vpack.c.bf16 %v148_v27, %v144_v26  ;;  %v150_v30 = vld [vmem:[%s1172_s3 + $0x78] sm:$0xff]  ;;  %v147_v32 = vld [vmem:[%s1172_s3 + $0x60] sm:$0xff]  ;;  %v145_v35 = vld [vmem:[%s1172_s3 + $0x50] sm:$0xff]  ;;  %v323_v19 = vshrl.u32 %v322_v16, 7  ;;  %vm1123_vm7 = vcmp.lt.s32.totalorder %v322_v16, 512 }
   0x9   :  { %831 = vmatprep.subr.bf16.mxu0 %v914_v0  ;;  %838 = vmatpush1.bf16.msra.mxu1 %v1011_v22  ;;  %v1043_v33 = vpack.c.bf16 %v150_v30, %v146_v28  ;;  %v1045_v34 = vpack.c.bf16 %v147_v32, %v143_v31  ;;  %v149_v36 = vld [vmem:[%s1172_s3 + $0x70] sm:$0xff]  ;;  %v152_v38 = vld [vmem:[%s1172_s3 + $0x88] sm:$0xff]  ;;  %v154_v40 = vld [vmem:[%s1172_s3 + $0x98] sm:$0xff] }
   0xa   :  { %840 = vmatprep.subr.bf16.mxu1 %v1032_v29  ;;  %v1054_v37 = vpack.c.bf16 %v149_v36, %v145_v35  ;;  %v156_v39 = vld [vmem:[%s1172_s3 + $0xa8] sm:$0xff]  ;;  %v158_v42 = vld [vmem:[%s1172_s3 + $0xb8] sm:$0xff]  ;;  %v151_v43 = vld [vmem:[%s1172_s3 + $0x80] sm:$0xff] }
   0xb   :  { %v843_v41 = vpack.c.bf16 %v156_v39, %v152_v38  ;;  %v155_v44 = vld [vmem:[%s1172_s3 + $0xa0] sm:$0xff]  ;;  %v859_v45 = vpack.c.bf16 %v158_v42, %v154_v40  ;;  %v153_v47 = vld [vmem:[%s1172_s3 + $0x90] sm:$0xff]  ;;  %v160_v49 = vld [vmem:[%s1172_s3 + $0xc8] sm:$0xff] }
   0xc   :  { %834 = vmatpush3.bf16.msk.msra.mxu0 %vm833_vm3, %v832_v12  ;;  %v845_v46 = vpack.c.bf16 %v155_v44, %v151_v43  ;;  %v157_v48 = vld [vmem:[%s1172_s3 + $0xb0] sm:$0xff]  ;;  %v164_v51 = vld [vmem:[%s1172_s3 + $0xe8] sm:$0xff]  ;;  %v162_v52 = vld [vmem:[%s1172_s3 + $0xd8] sm:$0xff] }
   0xd   :  { %852 = vmatprep.subr.bf16.mxu0 %v851_v21  ;;  %842 = vmatpush1.bf16.msra.mxu1 %v1045_v34  ;;  %v861_v50 = vpack.c.bf16 %v157_v48, %v153_v47  ;;  %v166_v53 = vld [vmem:[%s1172_s3 + $0xf8] sm:$0xff]  ;;  %v847_v54 = vpack.c.bf16 %v164_v51, %v160_v49  ;;  %v159_v56 = vld [vmem:[%s1172_s3 + $0xc0] sm:$0xff]  ;;  %v161_v58 = vld [vmem:[%s1172_s3 + $0xd0] sm:$0xff] }
   0xe   :  { %844 = vmatprep.subr.bf16.mxu1 %v843_v41  ;;  %v863_v55 = vpack.c.bf16 %v166_v53, %v162_v52  ;;  %v163_v57 = vld [vmem:[%s1172_s3 + $0xe0] sm:$0xff]  ;;  %v165_v60 = vld [vmem:[%s1172_s3 + $0xf0] sm:$0xff]  ;;  %s919_s3 = smov 64   ;;  %v594_v51 = vld [vmem:[%s1175_s4 + $0x8] sm:$0xff] }
   0xf   :  { %823 = vmatmul.mubr.msk.f32.vlgmr.msra.gmra.mrb[0].mxu0 %vm35_vm4, %v28_v13  ;;  %v849_v59 = vpack.c.bf16 %v163_v57, %v159_v56  ;;  %v865_v61 = vpack.c.bf16 %v165_v60, %v161_v58  ;;  %v602_v31 = vld [vmem:[%s1173_s6] sm:$0xff]  ;;  %v596_v57 = vld [vmem:[%s1175_s4 + $0x18] sm:$0xff]  ;;  %v595_v58 = vld [vmem:[%s1175_s4 + $0x10] sm:$0xff] }
  0x10   :  { %306 = vmatprep.mubr.f32.mxu0 %v916_v6  ;;  %854 = vmatpush1.bf16.msra.mxu0 %v1019_v25  ;;  %v593_v52 = vld [vmem:[%s1175_s4] sm:$0xff] }
  0x11   :  { %856 = vmatprep.subr.bf16.mxu0 %v1043_v33  ;;  %846 = vmatpush1.bf16.msra.mxu1 %v845_v46 }
  0x12   :  { %848 = vmatprep.subr.bf16.mxu1 %v847_v54  ;;  %605 = vperm.xlu1 %907, %v602_v31  }
  0x14   :  { %858 = vmatpush1.bf16.msra.mxu0 %v1054_v37 }
  0x15   :  { %860 = vmatprep.subr.bf16.mxu0 %v859_v45  ;;  %850 = vmatpush1.bf16.msra.mxu1 %v849_v59 }
  0x16   :  { %868 = vmatprep.subr.bf16.mxu1 %v835_v17  ;;  %v920_v17 = vmov 1966171168  }
  0x17   :  { %v320_v18 = vunpack.c.l.s4 %v920_v17 }
  0x18   :  { %862 = vmatpush1.bf16.msra.mxu0 %v861_v50 }
  0x19   :  { %864 = vmatprep.subr.bf16.mxu0 %v863_v55  ;;  %v321_v20 = vunpack.c.0.s8 %v320_v18 }
  0x1b   :  { %v324_v23 = vsub.s32 %v321_v20, %v323_v19 }
  0x1c   :  { %866 = vmatpush1.bf16.msra.mxu0 %v865_v61 }
  0x1d   :  { %884 = vmatprep.subr.bf16.mxu0 %v851_v21  ;;  %v349_v21 = vsub.s32 0, %v323_v19 }
  0x82   :  { %v118_v63 = vpop.permute.xlu0 %117 }
  0xe2   :  { %v109_v62 = vpop.f32.mrb[0].mxu0 }
  0xe3   :  { %v113_v0 = vmax.f32 %v109_v62, 0.0  ;;  %v824_v1 = vpop.f32.mrb[1].mxu0  ;;  %v601_v62 = vld [vmem:[%s1176_s5] sm:$0xff] }
  0xe5   :  { %v120_v2 = vmul.f32 %v118_v63, %v113_v0 }
  0xe7   :  { %v122_v3 = vsel %vm121_vm5, %v120_v2, 0.0  ;;  %v606_v2 = vpop.permute.xlu1 %605 }
  0xe8   :  { %v123_v4 = vrot.slane %v122_v3, 4 }
  0xea   :  { %v124_v5 = vadd.f32 %v123_v4, %v122_v3 }
  0xec   :  { %v125_v7 = vrot.slane %v124_v5, 2 }
  0xee   :  { %v126_v8 = vadd.f32 %v125_v7, %v124_v5 }
  0xf0   :  { %v127_v9 = vrot.slane %v126_v8, 1 }
  0xf2   :  { %v128_v10 = vadd.f32 %v127_v9, %v126_v8 }
  0xf4   :  { %v795_v11 = vmul.f32 -1.442695, %v128_v10 }
  0xf6   :  { %908 = vpow2.f32 %v795_v11 }
 0x100   :  { %v909_v12 = vpop.eup %908 }
 0x101   :  { %v132_v13 = vadd.f32 1.0, %v909_v12 }
 0x103   :  { %910 = vrcp.f32 %v132_v13 }
 0x10d   :  { %v911_v14 = vpop.eup %910 }
 0x10e   :  { %395 = vrot.lane.b32.xlu0 %v911_v14, %s919_s3  ;;  %796 = vmatmul.mubr.msk.f32.vlgmr.msra.gmra.mrb[0].mxu1 %vm167_vm6, %v911_v14 }
 0x10f   :  { %797 = vmatmul.mubr.msk.f32.vlgmr.msra.gmra.mrb[2].mxu0 %vm167_vm6, %v911_v14  ;;  %870 = vmatpush1.bf16.msra.mxu1 %v1011_v22 }
 0x110   :  { %886 = vmatpush1.bf16.msra.mxu0 %v1019_v25  ;;  %872 = vmatprep.subr.bf16.mxu1 %v1032_v29 }
 0x111   :  { %888 = vmatprep.subr.bf16.mxu0 %v1043_v33  ;;  %463 = vmatprep.mubr.f32.mxu1 %v916_v6 }
 0x112   :  { %534 = vmatprep.mubr.f32.mxu0 %v916_v6 }
 0x113   :  { %874 = vmatpush1.bf16.msra.mxu1 %v1045_v34 }
 0x114   :  { %890 = vmatpush1.bf16.msra.mxu0 %v1054_v37  ;;  %876 = vmatprep.subr.bf16.mxu1 %v843_v41 }
 0x115   :  { %892 = vmatprep.subr.bf16.mxu0 %v859_v45 }
 0x117   :  { %878 = vmatpush1.bf16.msra.mxu1 %v845_v46 }
 0x118   :  { %894 = vmatpush1.bf16.msra.mxu0 %v861_v50  ;;  %880 = vmatprep.subr.bf16.mxu1 %v847_v54 }
 0x119   :  { %896 = vmatprep.subr.bf16.mxu0 %v863_v55 }
 0x11b   :  { %882 = vmatpush1.bf16.msra.mxu1 %v849_v59 }
 0x11c   :  { %898 = vmatpush1.bf16.msra.mxu0 %v865_v61 }
 0x180   :  { %v396_v15 = vpop.permute.xlu0 %395 }
 0x181   :  { %798 = vmatmul.mubr.msk.f32.vlgmr.msra.gmra.mrb[2].mxu1 %vm167_vm6, %v396_v15  ;;  %799 = vmatmul.mubr.msk.f32.vlgmr.msra.gmra.mrb[4].mxu0 %vm167_vm6, %v396_v15 }
 0x182   :  { %676 = vmatprep.mubr.f32.mxu1 %v916_v6 }
 0x1e1   :  { %v237_v22 = vpop.f32.mrb[0].mxu1 }
 0x1e2   :  { %v350_v24 = vrot.slane %v237_v22, %v349_v21  ;;  %v308_v25 = vpop.f32.mrb[2].mxu0  ;;  %v239_v26 = vpop.f32.mrb[1].mxu1 }
 0x1e3   :  { %v358_v27 = vrot.slane %v308_v25, %v349_v21  ;;  %v317_v28 = vcombine.low %v237_v22, %v239_v26  ;;  %v354_v29 = vrot.slane %v239_v26, %v349_v21  ;;  %v310_v30 = vpop.f32.mrb[3].mxu0 }
 0x1e4   :  { %v318_v32 = vcombine.low %v308_v25, %v310_v30  ;;  %v362_v33 = vrot.slane %v310_v30, %v349_v21 }
 0x1e5   :  { %v325_v34 = vrot.slane %v317_v28, %v324_v23 }
 0x1e6   :  { %v332_v35 = vrot.slane %v318_v32, %v324_v23 }
 0x1e8   :  { %v333_v36 = vcombine.low %v325_v34, %v332_v35 }
 0x1ea   :  { %v340_v38 = vrot.slane %v333_v36, %v324_v23 }
 0x1ec   :  { %346 = vst.msk [vmem:[%s1174_s8] ss:$2 sm:$0xf] %vm1123_vm7, %v340_v38 }
 0x254   :  { %v465_v39 = vpop.f32.mrb[2].mxu1  ;;  %v536_v40 = vpop.f32.mrb[4].mxu0 }
 0x255   :  { %v575_v41 = vrot.slane %v465_v39, %v349_v21  ;;  %v583_v42 = vrot.slane %v536_v40, %v349_v21  ;;  %v467_v43 = vpop.f32.mrb[3].mxu1  ;;  %v538_v44 = vpop.f32.mrb[5].mxu0 }
 0x256   :  { %v545_v45 = vcombine.low %v465_v39, %v467_v43  ;;  %v579_v46 = vrot.slane %v467_v43, %v349_v21  ;;  %v546_v47 = vcombine.low %v536_v40, %v538_v44  ;;  %v587_v48 = vrot.slane %v538_v44, %v349_v21 }
 0x257   :  { %v589_v49 = vsel %vm588_vm8, %v350_v24, %v575_v41  ;;  %v591_v50 = vsel %vm588_vm8, %v358_v27, %v583_v42 }
 0x258   :  { %v553_v53 = vrot.slane %v545_v45, %v324_v23  ;;  %v560_v54 = vrot.slane %v546_v47, %v324_v23  ;;  %v590_v55 = vsel %vm588_vm8, %v354_v29, %v579_v46  ;;  %v592_v56 = vsel %vm588_vm8, %v362_v33, %v587_v48 }
 0x259   :  { %v598_v60 = vmul.f32 %v594_v51, %v590_v55  ;;  %v597_v61 = vmul.f32 %v593_v52, %v589_v49  ;;  %v600_v0 = vmul.f32 %v596_v57, %v592_v56  ;;  %v599_v1 = vmul.f32 %v595_v58, %v591_v50 }
 0x25a   :  { %v561_v59 = vcombine.low %v553_v53, %v560_v54 }
 0x25b   :  { %612 = vmatprep.subr.mxu1 %v598_v60 }
 0x25c   :  { %v568_v63 = vrot.slane %v561_v59, %v324_v23  ;;  %613 = vmatpush1.msra.mxu1 %v597_v61 }
 0x25d   :  { %801 = vmatmul.mubr.msk.f32.vlgmr.msra.gmra.mrb[4].mxu1 %vm608_vm9, %v601_v62  ;;  %683 = vmatprep.subr.mxu1 %v600_v0 }
 0x25e   :  { %800 = vst.msk [vmem:[%s1174_s8 + $0x1] ss:$2 sm:$0xf] %vm1123_vm7, %v568_v63  ;;  %684 = vmatpush1.msra.mxu1 %v599_v1  ;;  %747 = vmatprep.mubr.f32.mxu1 %v916_v6 }
 0x261   :  { %802 = vmatmul.mubr.msk.f32.vlgmr.msra.gmra.mrb[6].mxu1 %vm608_vm9, %v601_v62 }
 0x330   :  { %v678_v3 = vpop.f32.mrb[4].mxu1 }
 0x331   :  { %v679_v4 = vadd.f32 %v678_v3, %v606_v2  ;;  %v680_v5 = vpop.f32.mrb[5].mxu1 }
 0x332   :  { %v681_v7 = vadd.f32 %v680_v5, %v606_v2 }
 0x334   :  { %v754_v8 = vadd.f32 %v681_v7, %v679_v4  ;;  %v749_v9 = vpop.f32.mrb[6].mxu1 }
 0x335   :  { %v750_v10 = vadd.f32 %v749_v9, %v606_v2  ;;  %v751_v11 = vpop.f32.mrb[7].mxu1 }
 0x336   :  { %v752_v12 = vadd.f32 %v751_v11, %v606_v2 }
 0x337   :  { %v755_v13 = vadd.f32 %v754_v8, %v750_v10 }
 0x339   :  { %v756_v14 = vadd.f32 %v755_v13, %v752_v12 }
 0x33b   :  { %757 = vadd.xlane.f32.xlu1 %v756_v14 }
 0x3c8   :  { %v758_v15 = vpop.xlane.xlu1 %757 }
 0x3c9   :  { %v760_v16 = vmul.f32 0.001953125, %v758_v15 }
 0x3cb   :  { %v761_v17 = vsub.f32 %v679_v4, %v760_v16  ;;  %v762_v18 = vsub.f32 %v681_v7, %v760_v16  ;;  %v763_v19 = vsub.f32 %v750_v10, %v760_v16  ;;  %v764_v6 = vsub.f32 %v752_v12, %v760_v16 }
 0x3cd   :  { %v765_v20 = vmul.f32 %v761_v17, %v761_v17  ;;  %v766_v21 = vmul.f32 %v762_v18, %v762_v18  ;;  %v767_v22 = vmul.f32 %v763_v19, %v763_v19  ;;  %v768_v24 = vmul.f32 %v764_v6, %v764_v6 }
 0x3cf   :  { %v769_v23 = vadd.f32 %v766_v21, %v765_v20 }
 0x3d1   :  { %v770_v25 = vadd.f32 %v769_v23, %v767_v22 }
 0x3d3   :  { %v771_v26 = vadd.f32 %v770_v25, %v768_v24 }
 0x3d5   :  { %772 = vadd.xlane.f32.xlu0 %v771_v26 }
 0x462   :  { %v773_v27 = vpop.xlane.xlu0 %772 }
 0x463   :  { %v774_v28 = vmul.f32 0.001953125, %v773_v27 }
 0x465   :  { %v775_v29 = vadd.f32 1e-05, %v774_v28 }
 0x467   :  { %912 = vrsqrt.f32 %v775_v29 }
 0x471   :  { %v913_v30 = vpop.eup %912 }
 0x472   :  { %v777_v31 = vmul.f32 %v913_v30, %v761_v17  ;;  %v778_v32 = vmul.f32 %v913_v30, %v762_v18  ;;  %v779_v33 = vmul.f32 %v913_v30, %v763_v19  ;;  %v780_v34 = vmul.f32 %v913_v30, %v764_v6 }
 0x474   :  { %781 = vst [vmem:[%s1177_s7] sm:$0xff] %v777_v31  ;;  %782 = vst [vmem:[%s1177_s7 + $0x8] sm:$0xff] %v778_v32 }
 0x475   :  { %783 = vst [vmem:[%s1177_s7 + $0x10] sm:$0xff] %v779_v33  ;;  %784 = vst [vmem:[%s1177_s7 + $0x18] sm:$0xff] %v780_v34 }

</bundles_post_ra>
